<compile_context>
chip_gen: v5e
topology: v5e:2x2
jax: 0.10.0
libtpu: 0.0.40
codegen_flags: <defaults>
</compile_context>

<pallas_src>
import math

import jax
import jax.numpy as jnp
from jax.experimental import pallas as pl
from jax.experimental.pallas import tpu as pltpu


# ---------------------------------------------------------------------------
# Kernel: whole Critic forward for one batch tile; output is a lane-dense row.
# ---------------------------------------------------------------------------
def _critic_kernel(obs_ref, acts_ref, wo_ref, bo_ref, wa_ref, ba_ref,
                   w2o_ref, w2a_ref, b2_ref, wc_ref, bc_ref, out_ref):
    def lrelu(v):
        return jnp.where(v > 0, v, 0.01 * v)      # nn.LeakyReLU(0.01)

    cdt = w2o_ref.dtype                            # bf16 on low-precision path

    # Layer 1: two MXU passes, f32 accumulation, LeakyReLU epilogue in f32.
    h_o = lrelu(jnp.dot(obs_ref[...], wo_ref[...],
                        preferred_element_type=jnp.float32) + bo_ref[...])
    h_a = lrelu(jnp.dot(acts_ref[...], wa_ref[...],
                        preferred_element_type=jnp.float32) + ba_ref[...])

    # Layer 2 on the split weight halves (equivalent to concat([h_o,h_a])@W2).
    h2 = lrelu(
        jnp.dot(h_o.astype(cdt), w2o_ref[...], preferred_element_type=jnp.float32)
        + jnp.dot(h_a.astype(cdt), w2a_ref[...], preferred_element_type=jnp.float32)
        + b2_ref[...])

    # Final N=1 layer as a lane-dense (1, tb) row: wc (1,32) @ h2^T (32,tb).
    row = jnp.dot(wc_ref[...], h2.astype(cdt).T,
                  preferred_element_type=jnp.float32) + bc_ref[...]
    out_ref[...] = row.reshape(out_ref.shape)


def _round_up(x, m):
    return (x + m - 1) // m * m


def critic_forward(obs, acts, params, *, tile_b=4096, input_dtype=jnp.float32):
    """obs: (B, obs_dim) f32, acts: (B, act_dim) f32 -> (B, 1) f32.

    `tile_b` is the batch tile size (aligned to the sublane pack: 8 for f32,
    16 for bf16).  Set `input_dtype=jnp.bfloat16` at large training batches to
    halve HBM read traffic; accumulation and epilogues stay in f32.
    """
    wo, bo, wa, ba, w2o, w2a, b2, wc_row, bc = params
    B, obs_dim = obs.shape
    act_dim = acts.shape[1]

    # Batch tiling: sublane-aligned, capped so that (when the batch allows it)
    # there are >= 2 grid steps (dual-TensorCore split on v7x).
    align = 16 if input_dtype == jnp.bfloat16 else 8
    tb = max(align, _round_up(int(tile_b), align))
    tb = min(tb, max(align, _round_up(pl.cdiv(max(B, 1), 2), align)))
    num_tiles = pl.cdiv(max(B, 1), tb)

    if input_dtype != jnp.float32:
        obs, acts = obs.astype(input_dtype), acts.astype(input_dtype)
        wo, wa = wo.astype(input_dtype), wa.astype(input_dtype)
        w2o, w2a = w2o.astype(input_dtype), w2a.astype(input_dtype)
        wc_row = wc_row.astype(input_dtype)

    data2d = lambda i: (i, 0)        # streamed batch tiles
    resident = lambda i: (0, 0)      # weights/biases pinned in VMEM

    out = pl.pallas_call(
        _critic_kernel,
        out_shape=jax.ShapeDtypeStruct((num_tiles, 1, tb), jnp.float32),
        grid_spec=pltpu.PrefetchScalarGridSpec(
            num_scalar_prefetch=0,
            grid=(num_tiles,),
            in_specs=[
                pl.BlockSpec((tb, obs_dim), data2d),     # obs tile (streamed)
                pl.BlockSpec((tb, act_dim), data2d),     # acts tile (streamed)
                pl.BlockSpec((obs_dim, 64), resident),   # Wo
                pl.BlockSpec((1, 64), resident),         # bo
                pl.BlockSpec((act_dim, 64), resident),   # Wa
                pl.BlockSpec((1, 64), resident),         # ba
                pl.BlockSpec((64, 32), resident),        # W2 top half
                pl.BlockSpec((64, 32), resident),        # W2 bottom half
                pl.BlockSpec((1, 32), resident),         # b2
                pl.BlockSpec((1, 32), resident),         # wc row
                pl.BlockSpec((1, 1), resident),          # bc
            ],
            out_specs=pl.BlockSpec((1, 1, tb), lambda i: (i, 0, 0)),
        ),
        compiler_params=pltpu.CompilerParams(
            dimension_semantics=("parallel",),           # dual-TC split on v7x
            vmem_limit_bytes=32 * 1024 * 1024,
        ),
    )(obs, acts, wo, bo, wa, ba, w2o, w2a, b2, wc_row, bc)

    # (num_tiles, 1, tb) row-major flatten == global batch order.
    return out.reshape(num_tiles * tb, 1)[:B]


# ---------------------------------------------------------------------------
# Parameter construction (mirrors nn.Linear default init + Critic.reset_params
# gain scaling on the weights only), already in the kernel's split layout.
# ---------------------------------------------------------------------------
def init_critic_params(key, n_agent, dim_obs, dim_action):
    obs_dim = dim_obs * n_agent
    act_dim = dim_action * n_agent
    gain = math.sqrt(2.0 / (1.0 + 0.01 ** 2))  # calculate_gain('leaky_relu')

    def linear(k, fan_in, fan_out, scale_w):
        kw, kb = jax.random.split(k)
        bound = 1.0 / math.sqrt(fan_in)
        w = jax.random.uniform(kw, (fan_in, fan_out), jnp.float32, -bound, bound)
        b = jax.random.uniform(kb, (1, fan_out), jnp.float32, -bound, bound)
        return w * scale_w, b

    k1, k2, k3, k4 = jax.random.split(key, 4)
    wo, bo = linear(k1, obs_dim, 64, gain)    # linear_o_c1
    wa, ba = linear(k2, act_dim, 64, gain)    # linear_a_c1
    w2, b2 = linear(k3, 128, 32, gain)        # linear_c2
    wc, bc = linear(k4, 32, 1, gain)          # linear_c

    w2o, w2a = w2[:64], w2[64:]               # split so the kernel skips concat
    wc_row = wc.T                             # (1, 32)
    return (wo, bo, wa, ba, w2o, w2a, b2, wc_row, bc)


def critic_reference(obs, acts, params):
    """Pure-JAX reference following the original (unfused) PyTorch forward."""
    wo, bo, wa, ba, w2o, w2a, b2, wc_row, bc = params
    lrelu = lambda v: jnp.where(v > 0, v, 0.01 * v)
    x_o = lrelu(obs @ wo + bo)
    x_a = lrelu(acts @ wa + ba)
    x_cat = jnp.concatenate([x_o, x_a], axis=1)
    w2 = jnp.concatenate([w2o, w2a], axis=0)
    h = lrelu(x_cat @ w2 + b2)
    return h @ wc_row.T + bc


if __name__ == "__main__":
    # Small, deterministic shapes implied by the module.
    n_agent, dim_obs, dim_action = 3, 12, 4
    obs_dim = dim_obs * n_agent      # 36
    act_dim = dim_action * n_agent   # 12

    key = jax.random.PRNGKey(0)
    k_p, k_o, k_a, k_o2, k_a2 = jax.random.split(key, 5)
    params = init_critic_params(k_p, n_agent, dim_obs, dim_action)

    # --- test 1: tiny batch, single grid step ------------------------------
    batch = 8
    obs = jax.random.normal(k_o, (batch, obs_dim), jnp.float32)
    acts = jax.random.normal(k_a, (batch, act_dim), jnp.float32)
    val = jax.block_until_ready(critic_forward(obs, acts, params))
    ref = critic_reference(obs, acts, params)
    assert val.shape == (batch, 1)
    assert jnp.allclose(val, ref, atol=1e-4, rtol=1e-4)

    # --- test 2: default tiling -> 2 grid steps, partial last input block --
    B2 = 200
    obs2 = jax.random.normal(k_o2, (B2, obs_dim), jnp.float32)
    acts2 = jax.random.normal(k_a2, (B2, act_dim), jnp.float32)
    val2 = jax.block_until_ready(critic_forward(obs2, acts2, params))
    ref2 = critic_reference(obs2, acts2, params)
    assert val2.shape == (B2, 1)
    assert jnp.allclose(val2, ref2, atol=1e-4, rtol=1e-4)

    # --- test 3: explicit small tile -> 4 grid steps ------------------------
    val3 = jax.block_until_ready(critic_forward(obs2, acts2, params, tile_b=64))
    assert val3.shape == (B2, 1)
    assert jnp.allclose(val3, ref2, atol=1e-4, rtol=1e-4)

    # --- test 4: bf16 input/weight path (f32 accumulation/epilogue) ---------
    val4 = jax.block_until_ready(
        critic_forward(obs2, acts2, params, tile_b=64,
                       input_dtype=jnp.bfloat16))
    assert val4.shape == (B2, 1)
    assert jnp.allclose(val4, ref2, atol=1e-1, rtol=1e-1)

    print("KERNEL_OK")
</pallas_src>

<mosaic_0001>
module attributes {stable_mosaic.version = 11 : i64} {
  func.func @_critic_kernel(%arg0: i32, %arg1: memref<8x36xf32, #tpu.memory_space<vmem>>, %arg2: memref<8x12xf32, #tpu.memory_space<vmem>>, %arg3: memref<36x64xf32, #tpu.memory_space<vmem>>, %arg4: memref<1x64xf32, #tpu.memory_space<vmem>>, %arg5: memref<12x64xf32, #tpu.memory_space<vmem>>, %arg6: memref<1x64xf32, #tpu.memory_space<vmem>>, %arg7: memref<64x32xf32, #tpu.memory_space<vmem>>, %arg8: memref<64x32xf32, #tpu.memory_space<vmem>>, %arg9: memref<1x32xf32, #tpu.memory_space<vmem>>, %arg10: memref<1x32xf32, #tpu.memory_space<vmem>>, %arg11: memref<1x1xf32, #tpu.memory_space<vmem>>, %arg12: memref<1x1x8xf32, #tpu.memory_space<vmem>>) attributes {dimension_semantics = [#tpu.dimension_semantics<parallel>], iteration_bounds = array<i64: 1>, scalar_prefetch = 0 : i64, scratch_operands = 0 : i64, tpu.core_type = #tpu.core_type<tc>, window_params = [{transform_indices = @transform_0, window_bounds = array<i64: 8, 36>}, {transform_indices = @transform_1, window_bounds = array<i64: 8, 12>}, {pipeline_mode = #tpu.pipeline_mode<synchronous>, transform_indices = @transform_2, window_bounds = array<i64: 36, 64>}, {pipeline_mode = #tpu.pipeline_mode<synchronous>, transform_indices = @transform_3, window_bounds = array<i64: 1, 64>}, {pipeline_mode = #tpu.pipeline_mode<synchronous>, transform_indices = @transform_4, window_bounds = array<i64: 12, 64>}, {pipeline_mode = #tpu.pipeline_mode<synchronous>, transform_indices = @transform_5, window_bounds = array<i64: 1, 64>}, {pipeline_mode = #tpu.pipeline_mode<synchronous>, transform_indices = @transform_6, window_bounds = array<i64: 64, 32>}, {pipeline_mode = #tpu.pipeline_mode<synchronous>, transform_indices = @transform_7, window_bounds = array<i64: 64, 32>}, {pipeline_mode = #tpu.pipeline_mode<synchronous>, transform_indices = @transform_8, window_bounds = array<i64: 1, 32>}, {pipeline_mode = #tpu.pipeline_mode<synchronous>, transform_indices = @transform_9, window_bounds = array<i64: 1, 32>}, {pipeline_mode = #tpu.pipeline_mode<synchronous>, transform_indices = @transform_10, window_bounds = array<i64: 1, 1>}, {transform_indices = @transform_11, window_bounds = array<i64: 1, 1, 8>}]} {
    %c0 = arith.constant 0 : index
    %c0_0 = arith.constant 0 : index
    %0 = vector.load %arg1[%c0, %c0_0] : memref<8x36xf32, #tpu.memory_space<vmem>>, vector<8x36xf32>
    %c0_1 = arith.constant 0 : index
    %c0_2 = arith.constant 0 : index
    %1 = vector.load %arg3[%c0_1, %c0_2] : memref<36x64xf32, #tpu.memory_space<vmem>>, vector<36x64xf32>
    %cst = arith.constant dense<0.000000e+00> : vector<8x64xf32>
    %2 = tpu.matmul %0, %1, %cst {dimension_numbers = #tpu.dot_dimension_numbers<[1], [0], [0], [1], [0, 0, 1, 1], [], []>} : vector<8x36xf32>, vector<36x64xf32>, vector<8x64xf32> -> vector<8x64xf32>
    %c0_3 = arith.constant 0 : index
    %c0_4 = arith.constant 0 : index
    %3 = vector.load %arg4[%c0_3, %c0_4] : memref<1x64xf32, #tpu.memory_space<vmem>>, vector<1x64xf32>
    %4 = vector.broadcast %3 : vector<1x64xf32> to vector<8x64xf32>
    %5 = arith.addf %2, %4 : vector<8x64xf32>
    %cst_5 = arith.constant 0.000000e+00 : f32
    %6 = vector.broadcast %cst_5 : f32 to vector<8x64xf32>
    %7 = arith.cmpf ogt, %5, %6 : vector<8x64xf32>
    %cst_6 = arith.constant 0.00999999977 : f32
    %8 = vector.broadcast %cst_6 : f32 to vector<8x64xf32>
    %9 = arith.mulf %8, %5 : vector<8x64xf32>
    %10 = arith.select %7, %5, %9 : vector<8x64xi1>, vector<8x64xf32>
    %c0_7 = arith.constant 0 : index
    %c0_8 = arith.constant 0 : index
    %11 = vector.load %arg2[%c0_7, %c0_8] : memref<8x12xf32, #tpu.memory_space<vmem>>, vector<8x12xf32>
    %c0_9 = arith.constant 0 : index
    %c0_10 = arith.constant 0 : index
    %12 = vector.load %arg5[%c0_9, %c0_10] : memref<12x64xf32, #tpu.memory_space<vmem>>, vector<12x64xf32>
    %cst_11 = arith.constant dense<0.000000e+00> : vector<8x64xf32>
    %13 = tpu.matmul %11, %12, %cst_11 {dimension_numbers = #tpu.dot_dimension_numbers<[1], [0], [0], [1], [0, 0, 1, 1], [], []>} : vector<8x12xf32>, vector<12x64xf32>, vector<8x64xf32> -> vector<8x64xf32>
    %c0_12 = arith.constant 0 : index
    %c0_13 = arith.constant 0 : index
    %14 = vector.load %arg6[%c0_12, %c0_13] : memref<1x64xf32, #tpu.memory_space<vmem>>, vector<1x64xf32>
    %15 = vector.broadcast %14 : vector<1x64xf32> to vector<8x64xf32>
    %16 = arith.addf %13, %15 : vector<8x64xf32>
    %cst_14 = arith.constant 0.000000e+00 : f32
    %17 = vector.broadcast %cst_14 : f32 to vector<8x64xf32>
    %18 = arith.cmpf ogt, %16, %17 : vector<8x64xf32>
    %cst_15 = arith.constant 0.00999999977 : f32
    %19 = vector.broadcast %cst_15 : f32 to vector<8x64xf32>
    %20 = arith.mulf %19, %16 : vector<8x64xf32>
    %21 = arith.select %18, %16, %20 : vector<8x64xi1>, vector<8x64xf32>
    %c0_16 = arith.constant 0 : index
    %c0_17 = arith.constant 0 : index
    %22 = vector.load %arg7[%c0_16, %c0_17] : memref<64x32xf32, #tpu.memory_space<vmem>>, vector<64x32xf32>
    %cst_18 = arith.constant dense<0.000000e+00> : vector<8x32xf32>
    %23 = tpu.matmul %10, %22, %cst_18 {dimension_numbers = #tpu.dot_dimension_numbers<[1], [0], [0], [1], [0, 0, 1, 1], [], []>} : vector<8x64xf32>, vector<64x32xf32>, vector<8x32xf32> -> vector<8x32xf32>
    %c0_19 = arith.constant 0 : index
    %c0_20 = arith.constant 0 : index
    %24 = vector.load %arg8[%c0_19, %c0_20] : memref<64x32xf32, #tpu.memory_space<vmem>>, vector<64x32xf32>
    %cst_21 = arith.constant dense<0.000000e+00> : vector<8x32xf32>
    %25 = tpu.matmul %21, %24, %cst_21 {dimension_numbers = #tpu.dot_dimension_numbers<[1], [0], [0], [1], [0, 0, 1, 1], [], []>} : vector<8x64xf32>, vector<64x32xf32>, vector<8x32xf32> -> vector<8x32xf32>
    %26 = arith.addf %23, %25 : vector<8x32xf32>
    %c0_22 = arith.constant 0 : index
    %c0_23 = arith.constant 0 : index
    %27 = vector.load %arg9[%c0_22, %c0_23] : memref<1x32xf32, #tpu.memory_space<vmem>>, vector<1x32xf32>
    %28 = vector.broadcast %27 : vector<1x32xf32> to vector<8x32xf32>
    %29 = arith.addf %26, %28 : vector<8x32xf32>
    %cst_24 = arith.constant 0.000000e+00 : f32
    %30 = vector.broadcast %cst_24 : f32 to vector<8x32xf32>
    %31 = arith.cmpf ogt, %29, %30 : vector<8x32xf32>
    %cst_25 = arith.constant 0.00999999977 : f32
    %32 = vector.broadcast %cst_25 : f32 to vector<8x32xf32>
    %33 = arith.mulf %32, %29 : vector<8x32xf32>
    %34 = arith.select %31, %29, %33 : vector<8x32xi1>, vector<8x32xf32>
    %c0_26 = arith.constant 0 : index
    %c0_27 = arith.constant 0 : index
    %35 = vector.load %arg10[%c0_26, %c0_27] : memref<1x32xf32, #tpu.memory_space<vmem>>, vector<1x32xf32>
    %36 = tpu.transpose %34, [1, 0] : vector<8x32xf32> -> vector<32x8xf32>
    %cst_28 = arith.constant dense<0.000000e+00> : vector<1x8xf32>
    %37 = tpu.matmul %35, %36, %cst_28 {dimension_numbers = #tpu.dot_dimension_numbers<[1], [0], [0], [1], [0, 0, 1, 1], [], []>} : vector<1x32xf32>, vector<32x8xf32>, vector<1x8xf32> -> vector<1x8xf32>
    %c0_29 = arith.constant 0 : index
    %c0_30 = arith.constant 0 : index
    %38 = vector.load %arg11[%c0_29, %c0_30] : memref<1x1xf32, #tpu.memory_space<vmem>>, vector<1x1xf32>
    %39 = vector.broadcast %38 : vector<1x1xf32> to vector<1x8xf32>
    %40 = arith.addf %37, %39 : vector<1x8xf32>
    %41 = vector.shape_cast %40 : vector<1x8xf32> to vector<1x1x8xf32>
    %c0_31 = arith.constant 0 : index
    %c0_32 = arith.constant 0 : index
    %c0_33 = arith.constant 0 : index
    %42 = vector.load %arg12[%c0_31, %c0_32, %c0_33] : memref<1x1x8xf32, #tpu.memory_space<vmem>>, vector<1x1x8xf32>
    tpu.vector_store %arg12[%c0_31, %c0_32, %c0_33], %41 {strides = array<i32>} : memref<1x1x8xf32, #tpu.memory_space<vmem>>, vector<1x1x8xf32>,
    return
  }
  func.func @transform_0(%arg0: i32) -> (i32, i32) {
    %c0_i32 = arith.constant 0 : i32
    %c0_i32_0 = arith.constant 0 : i32
    return %arg0, %c0_i32 : i32, i32
  }
  func.func @transform_1(%arg0: i32) -> (i32, i32) {
    %c0_i32 = arith.constant 0 : i32
    %c0_i32_0 = arith.constant 0 : i32
    return %arg0, %c0_i32 : i32, i32
  }
  func.func @transform_2(%arg0: i32) -> (i32, i32) {
    %c0_i32 = arith.constant 0 : i32
    %c0_i32_0 = arith.constant 0 : i32
    %c0_i32_1 = arith.constant 0 : i32
    return %c0_i32, %c0_i32_0 : i32, i32
  }
  func.func @transform_3(%arg0: i32) -> (i32, i32) {
    %c0_i32 = arith.constant 0 : i32
    %c0_i32_0 = arith.constant 0 : i32
    %c0_i32_1 = arith.constant 0 : i32
    return %c0_i32, %c0_i32_0 : i32, i32
  }
  func.func @transform_4(%arg0: i32) -> (i32, i32) {
    %c0_i32 = arith.constant 0 : i32
    %c0_i32_0 = arith.constant 0 : i32
    %c0_i32_1 = arith.constant 0 : i32
    return %c0_i32, %c0_i32_0 : i32, i32
  }
  func.func @transform_5(%arg0: i32) -> (i32, i32) {
    %c0_i32 = arith.constant 0 : i32
    %c0_i32_0 = arith.constant 0 : i32
    %c0_i32_1 = arith.constant 0 : i32
    return %c0_i32, %c0_i32_0 : i32, i32
  }
  func.func @transform_6(%arg0: i32) -> (i32, i32) {
    %c0_i32 = arith.constant 0 : i32
    %c0_i32_0 = arith.constant 0 : i32
    %c0_i32_1 = arith.constant 0 : i32
    return %c0_i32, %c0_i32_0 : i32, i32
  }
  func.func @transform_7(%arg0: i32) -> (i32, i32) {
    %c0_i32 = arith.constant 0 : i32
    %c0_i32_0 = arith.constant 0 : i32
    %c0_i32_1 = arith.constant 0 : i32
    return %c0_i32, %c0_i32_0 : i32, i32
  }
  func.func @transform_8(%arg0: i32) -> (i32, i32) {
    %c0_i32 = arith.constant 0 : i32
    %c0_i32_0 = arith.constant 0 : i32
    %c0_i32_1 = arith.constant 0 : i32
    return %c0_i32, %c0_i32_0 : i32, i32
  }
  func.func @transform_9(%arg0: i32) -> (i32, i32) {
    %c0_i32 = arith.constant 0 : i32
    %c0_i32_0 = arith.constant 0 : i32
    %c0_i32_1 = arith.constant 0 : i32
    return %c0_i32, %c0_i32_0 : i32, i32
  }
  func.func @transform_10(%arg0: i32) -> (i32, i32) {
    %c0_i32 = arith.constant 0 : i32
    %c0_i32_0 = arith.constant 0 : i32
    %c0_i32_1 = arith.constant 0 : i32
    return %c0_i32, %c0_i32_0 : i32, i32
  }
  func.func @transform_11(%arg0: i32) -> (i32, i32, i32) {
    %c0_i32 = arith.constant 0 : i32
    %c0_i32_0 = arith.constant 0 : i32
    %c0_i32_1 = arith.constant 0 : i32
    return %arg0, %c0_i32, %c0_i32_0 : i32, i32, i32
  }
}

</mosaic_0001>

<bundles_post_ra>
// kernel: tpu_custom_call.1
= control target key start
LH: loop header
LB: loop body
LE: loop exit
PB: predicated region body
PF: predicated region fallthrough
CT: control target
= control target key end

     0   :  { %s438_s0 = inlined_call_operand.vmem [shape: f32[8,36], index: 0, kind: input, shape index: {}]   ;;  %s439_s1 = inlined_call_operand.vmem [shape: f32[8,12], index: 1, kind: input, shape index: {}]   ;;  %s440_s2 = inlined_call_operand.vmem [shape: f32[36,64], index: 2, kind: input, shape index: {}]   ;;  %s441_s3 = inlined_call_operand.vmem [shape: f32[1,64], index: 3, kind: input, shape index: {}]   ;;  %s442_s4 = inlined_call_operand.vmem [shape: f32[12,64], index: 4, kind: input, shape index: {}]   ;;  %s443_s5 = inlined_call_operand.vmem [shape: f32[1,64], index: 5, kind: input, shape index: {}]   ;;  %s444_s6 = inlined_call_operand.vmem [shape: f32[64,32], index: 6, kind: input, shape index: {}]   ;;  %s445_s7 = inlined_call_operand.vmem [shape: f32[64,32], index: 7, kind: input, shape index: {}]   ;;  %s446_s8 = inlined_call_operand.vmem [shape: f32[1,32], index: 8, kind: input, shape index: {}]   ;;  %s447_s9 = inlined_call_operand.vmem [shape: f32[1,32], index: 9, kind: input, shape index: {}]   ;;  %s448_s10 = inlined_call_operand.<no memory space> [shape: f32[1,1], index: 10, kind: input, shape index: {}]   ;;  %s449_s11 = inlined_call_operand.hbm [shape: f32[1,1,8], index: 11, kind: output, shape index: {}]  }
   0x1   :  { %v16_v0 = vstv %s448_s10 }
   0x2   :  { %17 = vst [vmem:[#allocation2] sm:$0x1] %v16_v0 }
   0x3   :  { %v46_v1 = vld [vmem:[%s440_s2 + $0x20] sm:$0xf]  ;;  %vm55_vm0 = vcmask 1043456   ;;  %v45_v2 = vld [vmem:[%s440_s2 + $0x18] sm:$0xff]  ;;  %v84_v3 = vld [vmem:[%s442_s4 + $0x8] sm:$0xf] }
   0x4   :  { %243 = vmatpush.msk.msra.mxu0 %vm55_vm0, %v46_v1  ;;  %v83_v4 = vld [vmem:[%s442_s4] sm:$0xff]  ;;  %v44_v5 = vld [vmem:[%s440_s2 + $0x10] sm:$0xff]  ;;  %245 = vmatpush.msk.msra.mxu1 %vm55_vm0, %v84_v3  ;;  %vm89_vm1 = vcmask 97280   ;;  %v134_v7 = vld [vmem:[%s445_s7 + $0x38] sm:$0xff]  ;;  %vm51_vm2 = vcmask 293888  }
   0x5   :  { %v82_v6 = vld [vmem:[%s439_s1] sm:$0xff]  ;;  %v133_v8 = vld [vmem:[%s445_s7 + $0x30] sm:$0xff]  ;;  %v126_v9 = vld [vmem:[%s444_s6 + $0x38] sm:$0xff]  ;;  %147 = vmatpush.msra.mxu2 %v134_v7 }
   0x6   :  { %71 = vmatpush.msra.mxu0 %v45_v2  ;;  %v43_v10 = vld [vmem:[%s440_s2 + $0x8] sm:$0xff]  ;;  %111 = vmatpush.msra.mxu1 %v83_v4  ;;  %v42_v11 = vld [vmem:[%s440_s2] sm:$0xff]  ;;  %v125_v13 = vld [vmem:[%s444_s6 + $0x30] sm:$0xff] }
   0x7   :  { %246 = vmatmul.msk.f32.vlgmr.msra.gmra.mxu1 %vm89_vm1, %v82_v6  ;;  %v132_v12 = vld [vmem:[%s445_s7 + $0x28] sm:$0xff]  ;;  %v41_v14 = vld [vmem:[%s438_s0] sm:$0xff]  ;;  %148 = vmatpush.msra.mxu2 %v133_v8 }
   0x8   :  { %72 = vmatpush.msra.mxu0 %v44_v5  ;;  %170 = vmatpush.msra.mxu3 %v126_v9  ;;  %v131_v15 = vld [vmem:[%s445_s7 + $0x20] sm:$0xff] }
   0xa   :  { %73 = vmatpush.msra.mxu0 %v43_v10 }
   0xb   :  { %18 = vsyncpa [#allocation4], 0  ;;  %149 = vmatpush.msra.mxu2 %v132_v12  ;;  %171 = vmatpush.msra.mxu3 %v125_v13  ;;  %v124_v16 = vld [vmem:[%s444_s6 + $0x28] sm:$0xff]  ;;  %v130_v17 = vld [vmem:[%s445_s7 + $0x18] sm:$0xff]  ;;  %vm135_vm4 = vcmask 523264   ;;  %v283_v37 = vmov 0  }
   0xc   :  { %74 = vmatpush.msra.mxu0 %v42_v11  ;;  %v123_v18 = vld [vmem:[%s444_s6 + $0x20] sm:$0xff]  ;;  %v129_v19 = vld [vmem:[%s445_s7 + $0x10] sm:$0xff]  ;;  %v122_v20 = vld [vmem:[%s444_s6 + $0x18] sm:$0xff]  ;;  %253 = vset.pattern.permute.xlu0 %v283_v37  ;;  %vm198_vm7 = vcmask 261120   ;;  %s284_s2 = smov [#allocation3]   ;;  %s234_s28 = sshll.u32 %s449_s11, 4  ;;  %s235_s28 = int_to_ptr.hbm [resolvable:$true] %s234_s28 }
   0xd   :  { %244 = vmatmul.msk.f32.vlgmr.msra.gmra.mxu0 %vm51_vm2, %v41_v14  ;;  %150 = vmatpush.msra.mxu2 %v131_v15  ;;  %v128_v21 = vld [vmem:[%s445_s7 + $0x8] sm:$0xff]  ;;  %v121_v22 = vld [vmem:[%s444_s6 + $0x10] sm:$0xff]  ;;  %v127_v23 = vld [vmem:[%s445_s7] sm:$0xff]  ;;  %s232_s10 = sshll.u32 %s284_s2, 4  ;;  %vm225_vm8 = vcmask 57344   ;;  %s233_s10 = int_to_ptr.vmem [resolvable:$true] %s232_s10 }
   0xe   :  { %172 = vmatpush.msra.mxu3 %v124_v16  ;;  %v120_v24 = vld [vmem:[%s444_s6 + $0x8] sm:$0xff]  ;;  %v119_v25 = vld [vmem:[%s444_s6] sm:$0xff] }
   0xf   :  { %151 = vmatpush.msra.mxu2 %v130_v17  ;;  %v254_v26 = vld [vmem:[%s443_s5] ss:$0 sm:$0xff] }
  0x10   :  { %173 = vmatpush.msra.mxu3 %v123_v18  ;;  %v255_v29 = vld [vmem:[%s441_s3] ss:$0 sm:$0xff] }
  0x11   :  { %152 = vmatpush.msra.mxu2 %v129_v19  ;;  %v191_v36 = vld [vmem:[#allocation2] sm:$0x1] }
  0x12   :  { %174 = vmatpush.msra.mxu3 %v122_v20  ;;  %194 = vperm.xlu0 %253, %v191_v36   ;;  %v256_v38 = vld [vmem:[%s446_s8] ss:$0 sm:$0xff] }
  0x13   :  { %153 = vmatpush.msra.mxu2 %v128_v21  ;;  %v190_v45 = vld [vmem:[%s447_s9] sm:$0x1] }
  0x14   :  { %175 = vmatpush.msra.mxu3 %v121_v22 }
  0x15   :  { %154 = vmatpush.msra.mxu2 %v127_v23 }
  0x16   :  { %176 = vmatpush.msra.mxu3 %v120_v24 }
  0x18   :  { %177 = vmatpush.msra.mxu3 %v119_v25 }
  0x84   :  { %v113_v27 = vpop.f32.mrf.mxu1  ;;  %v195_v46 = vpop.permute.xlu0 %194 }
  0x85   :  { %v114_v28 = vadd.f32 %v254_v26, %v113_v27  ;;  %v197_v47 = vperm.slane %v195_v46, 0 }
  0x87   :  { %v117_v30 = vmul.f32 0.01, %v114_v28  ;;  %vm116_vm3 = vcmp.gt.f32.partialorder %v114_v28, 0.0 }
  0x89   :  { %v118_v32 = vsel %vm116_vm3, %v114_v28, %v117_v30 }
  0x8a   :  { %v76_v31 = vpop.f32.mrf.mxu0  ;;  %247 = vmatmul.msk.f32.vlgmr.msra.gmra.mxu2 %vm135_vm4, %v118_v32 }
  0x8b   :  { %v77_v33 = vadd.f32 %v255_v29, %v76_v31 }
  0x8d   :  { %v80_v34 = vmul.f32 0.01, %v77_v33  ;;  %vm79_vm5 = vcmp.gt.f32.partialorder %v77_v33, 0.0 }
  0x8f   :  { %v81_v35 = vsel %vm79_vm5, %v77_v33, %v80_v34 }
  0x90   :  { %248 = vmatmul.msk.f32.vlgmr.msra.gmra.mxu3 %vm135_vm4, %v81_v35 }
 0x10d   :  { %v156_v39 = vpop.f32.mrf.mxu2 }
 0x113   :  { %v179_v40 = vpop.f32.mrf.mxu3 }
 0x114   :  { %v180_v41 = vadd.f32 %v179_v40, %v156_v39 }
 0x116   :  { %v186_v42 = vadd.f32 %v256_v38, %v180_v41 }
 0x118   :  { %vm187_vm6 = vcmp.gt.f32.partialorder %v186_v42, 0.0  ;;  %v188_v43 = vmul.f32 0.01, %v186_v42 }
 0x11a   :  { %v189_v44 = vsel %vm187_vm6, %v186_v42, %v188_v43 }
 0x11b   :  { %249 = vmatpush.xpose.msk.msrb.mxu1 %vm198_vm7, %v189_v44 }
 0x11e   :  { %250 = vmatmul.msk.f32.vlgmr.msrb.gmra.mxu1 %vm198_vm7, %v190_v45 }
 0x19b   :  { %v222_v48 = vpop.f32.mrf.mxu1 }
 0x19c   :  { %v223_v49 = vadd.f32 %v222_v48, %v197_v47 }
 0x19e   :  { %226 = vst.msk [vmem:[#allocation3] sm:$0x1] %vm225_vm8, %v223_v49 }
 0x19f   :  { %237 = dma.vmem_to_hbm [thread:$0]  %s233_s10, 16, %s235_s28, [#allocation4]  }
 0x1a0   :  { %281 = dma.done.wait [#allocation4], 16  }
 0x1a1   :  { %282 = vsyncadd [#allocation4], 4294967280 }
 0x1a2   :  { %242 = vsyncpa [#allocation4], 1 }

</bundles_post_ra>
